<compile_context>
chip_gen: v7x
topology: tpu7x:2x2x1
jax: 0.10.0
libtpu: 0.0.40
codegen_flags: <defaults>
</compile_context>

<pallas_src>
import functools

import jax
import jax.numpy as jnp
import numpy as np
from jax.experimental import pallas as pl
from jax.experimental.pallas import tpu as pltpu

KSIZE = 7
PAD = 3
_CONV_MAT_BYTES_CAP = 4 << 20     # use matmul-conv while (2*HW, HW) f32 <= 4 MiB


def _cbam_kernel(x_ref, w1t_ref, w2t_ref, conv_ref, out_ref, *, H, W,
                 conv_as_matmul):
    nb, C, HW = x_ref.shape
    xv = x_ref[...]                                     # (nb, C, HW) lane-dense

    # ---------------- Channel attention ----------------
    avg_c = jnp.mean(xv, axis=2)                        # (nb, C)  lane reduce
    max_c = jnp.max(xv, axis=2)                         # (nb, C)
    # Shared MLP for [avg; max] of every image in the block: 2 MXU matmuls.
    pooled = jnp.concatenate([avg_c, max_c], axis=0)    # (2nb, C)
    h = jnp.dot(pooled, w1t_ref[...], preferred_element_type=jnp.float32)
    h = jnp.maximum(h, 0.0)                             # (2nb, Cd)
    y = jnp.dot(h, w2t_ref[...], preferred_element_type=jnp.float32)
    ca = jax.nn.sigmoid(y[:nb] + y[nb:])                # (nb, C)

    # ---------------- Spatial attention ----------------
    x1 = xv * ca[:, :, None].astype(xv.dtype)           # (nb, C, HW)
    avg_sp = jnp.mean(x1, axis=1)                       # (nb, HW) sublane reduce
    max_sp = jnp.max(x1, axis=1)                        # (nb, HW)

    if conv_as_matmul:
        # 7x7 'same' conv expressed exactly as one matmul against the
        # precomputed (2*HW, HW) tap-scatter matrix: MXU work, no in-kernel
        # padding / window slicing.
        sp = jnp.concatenate([avg_sp, max_sp], axis=1)                   # (nb, 2HW)
        conv = jnp.dot(sp, conv_ref[...], preferred_element_type=jnp.float32)
    else:
        # Fallback for large H*W (tap-scatter matrix would not fit VMEM):
        # fully unrolled shifted-window conv; one window per tap is shared by
        # the stacked [avg; max] maps; scalar taps come from SMEM.
        sp = jnp.concatenate([avg_sp, max_sp], axis=0).reshape(2 * nb, H, W)
        zc = jnp.zeros((2 * nb, H, PAD), sp.dtype)
        sp = jnp.concatenate([zc, sp, zc], axis=2)       # pad W
        zr = jnp.zeros((2 * nb, PAD, W + 2 * PAD), sp.dtype)
        sp = jnp.concatenate([zr, sp, zr], axis=1)       # (2nb, H+2P, W+2P)
        acc = jnp.zeros((nb, H, W), jnp.float32)
        for dy in range(KSIZE):
            for dx in range(KSIZE):
                wa = conv_ref[dy * KSIZE + dx]                      # avg tap
                wm = conv_ref[KSIZE * KSIZE + dy * KSIZE + dx]      # max tap
                win = sp[:, dy:dy + H, dx:dx + W]                   # (2nb, H, W)
                acc = acc + wa * win[:nb] + wm * win[nb:]
        conv = acc.reshape(nb, HW)

    sa = jax.nn.sigmoid(conv)                            # (nb, HW)

    # ---------------- Apply & lane-dense store ----------------
    out_ref[...] = (x1 * sa[:, None, :].astype(x1.dtype)).astype(out_ref.dtype)


@functools.lru_cache(maxsize=None)
def _conv_scatter_index(H, W):
    """Static (2*HW, HW) int map scattering the 2*K*K conv taps into a dense
    matrix; the sentinel index 2*K*K selects a zero appended to the taps."""
    HW = H * W
    sentinel = 2 * KSIZE * KSIZE
    idx = np.full((2, HW, HW), sentinel, dtype=np.int32)
    for oy in range(H):
        for ox in range(W):
            o = oy * W + ox
            for dy in range(KSIZE):
                iy = oy + dy - PAD
                if iy < 0 or iy >= H:
                    continue
                for dx in range(KSIZE):
                    ix = ox + dx - PAD
                    if ix < 0 or ix >= W:
                        continue
                    i = iy * W + ix
                    idx[0, i, o] = dy * KSIZE + dx
                    idx[1, i, o] = KSIZE * KSIZE + dy * KSIZE + dx
    return idx.reshape(2 * HW, HW)


def _pick_nb(N, per_image_bytes, target_bytes=2 << 20):
    """Largest batch-block that divides N, stays under the VMEM budget and
    keeps >= 2 parallel grid steps (feeds both v7x TensorCores)."""
    best = 1
    for nb in range(1, N + 1):
        if N % nb:
            continue
        if nb * per_image_bytes > target_bytes:
            break
        if N >= 2 and N // nb < 2:
            break
        best = nb
    return best


def cbam_forward(x, w1, w2, wconv, *, force_window_conv=False):
    """x: (N, C, H, W); w1: (C//div, C); w2: (C, C//div); wconv: (1, 2, 7, 7)."""
    N, C, H, W = x.shape
    Cd = w1.shape[0]
    HW = H * W

    x_flat = x.reshape(N, C, HW)                          # lane-dense layout
    w1t = jnp.asarray(w1, jnp.float32).T                  # (C, Cd)
    w2t = jnp.asarray(w2, jnp.float32).T                  # (Cd, C)
    wk = wconv.reshape(-1).astype(jnp.float32)            # (2*K*K,) avg taps, then max

    conv_mat_bytes = 2 * HW * HW * 4
    conv_as_matmul = (not force_window_conv) and conv_mat_bytes <= _CONV_MAT_BYTES_CAP

    if conv_as_matmul:
        # Scatter the 98 taps into a dense (2*HW, HW) matrix once (wrapper-side).
        w_ext = jnp.concatenate([wk, jnp.zeros((1,), jnp.float32)])
        conv_op = w_ext[_conv_scatter_index(H, W)]        # (2*HW, HW)
        conv_spec = pl.BlockSpec((2 * HW, HW), lambda n: (0, 0))
    else:
        conv_op = wk
        conv_spec = pl.BlockSpec(memory_space=pltpu.MemorySpace.SMEM)

    nb = _pick_nb(N, C * HW * x.dtype.itemsize)
    grid = (N // nb,)

    kernel = functools.partial(_cbam_kernel, H=H, W=W,
                               conv_as_matmul=conv_as_matmul)

    out = pl.pallas_call(
        kernel,
        out_shape=jax.ShapeDtypeStruct((N, C, HW), x.dtype),
        grid=grid,
        in_specs=[
            pl.BlockSpec((nb, C, HW), lambda n: (n, 0, 0)),
            pl.BlockSpec((C, Cd), lambda n: (0, 0)),
            pl.BlockSpec((Cd, C), lambda n: (0, 0)),
            conv_spec,
        ],
        out_specs=pl.BlockSpec((nb, C, HW), lambda n: (n, 0, 0)),
        compiler_params=pltpu.CompilerParams(
            dimension_semantics=("parallel",),
            # Blocks are capped at ~2 MiB and the conv matrix at ~4 MiB, so
            # double-buffered in/out + intermediates fit this scoped budget
            # comfortably on v5e/v6e (128 MiB) and v7x (64 MiB) VMEM.
            vmem_limit_bytes=32 * 1024 * 1024,
        ),
    )(x_flat, w1t, w2t, conv_op)

    return out.reshape(N, C, H, W)


def cbam_reference(x, w1, w2, wconv):
    """Pure-JAX reference mirroring the PyTorch CBAMBlock forward."""
    avg = jnp.mean(x, axis=(2, 3), keepdims=True)
    mx = jnp.max(x, axis=(2, 3), keepdims=True)

    def mlp(v):
        h = jnp.einsum('oc,nchw->nohw', w1, v)
        h = jnp.maximum(h, 0.0)
        return jnp.einsum('co,nohw->nchw', w2, h)

    ca = jax.nn.sigmoid(mlp(avg) + mlp(mx))
    x1 = x * ca

    avg_sp = jnp.mean(x1, axis=1, keepdims=True)
    max_sp = jnp.max(x1, axis=1, keepdims=True)
    sp = jnp.concatenate([avg_sp, max_sp], axis=1)        # (N, 2, H, W)
    conv = jax.lax.conv_general_dilated(
        sp, wconv, window_strides=(1, 1), padding=[(PAD, PAD), (PAD, PAD)],
        dimension_numbers=('NCHW', 'OIHW', 'NCHW'))
    sa = jax.nn.sigmoid(conv)
    return x1 * sa


if __name__ == "__main__":
    N, C, H, W = 2, 16, 16, 16
    DIV = 8

    key = jax.random.PRNGKey(0)
    kx, k1, k2, kc = jax.random.split(key, 4)
    x = jax.random.normal(kx, (N, C, H, W), jnp.float32)
    # Deterministic synthetic weights (shapes from the module's __init__):
    w1 = 0.1 * jax.random.normal(k1, (C // DIV, C), jnp.float32)      # fc1 (1x1 conv)
    w2 = 0.1 * jax.random.normal(k2, (C, C // DIV), jnp.float32)      # fc2 (1x1 conv)
    wconv = 0.1 * jax.random.normal(kc, (1, 2, KSIZE, KSIZE), jnp.float32)

    ref = cbam_reference(x, w1, w2, wconv)

    # Primary path: 7x7 conv as a single MXU matmul.
    out = jax.block_until_ready(cbam_forward(x, w1, w2, wconv))
    assert out.shape == (N, C, H, W)
    assert np.allclose(np.asarray(out), np.asarray(ref), atol=1e-5, rtol=1e-5), \
        "Pallas kernel (matmul-conv path) mismatch vs JAX reference"

    # Large-feature-map fallback path: unrolled shifted-window conv.
    out_fb = jax.block_until_ready(
        cbam_forward(x, w1, w2, wconv, force_window_conv=True))
    assert np.allclose(np.asarray(out_fb), np.asarray(ref), atol=1e-5, rtol=1e-5), \
        "Pallas kernel (window-conv path) mismatch vs JAX reference"

    print("KERNEL_OK")
</pallas_src>

<mosaic_0001>
module attributes {stable_mosaic.version = 11 : i64} {
  func.func @_cbam_kernel(%arg0: i32, %arg1: memref<1x16x256xf32, #tpu.memory_space<vmem>>, %arg2: memref<16x2xf32, #tpu.memory_space<vmem>>, %arg3: memref<2x16xf32, #tpu.memory_space<vmem>>, %arg4: memref<512x256xf32, #tpu.memory_space<vmem>>, %arg5: memref<1x16x256xf32, #tpu.memory_space<vmem>>) attributes {dimension_semantics = [#tpu.dimension_semantics<parallel>], iteration_bounds = array<i64: 2>, scalar_prefetch = 0 : i64, scratch_operands = 0 : i64, tpu.core_type = #tpu.core_type<tc>, window_params = [{transform_indices = @transform_0, window_bounds = array<i64: 1, 16, 256>}, {pipeline_mode = #tpu.pipeline_mode<synchronous>, transform_indices = @transform_1, window_bounds = array<i64: 16, 2>}, {pipeline_mode = #tpu.pipeline_mode<synchronous>, transform_indices = @transform_2, window_bounds = array<i64: 2, 16>}, {pipeline_mode = #tpu.pipeline_mode<synchronous>, transform_indices = @transform_3, window_bounds = array<i64: 512, 256>}, {transform_indices = @transform_4, window_bounds = array<i64: 1, 16, 256>}]} {
    %c0 = arith.constant 0 : index
    %c0_0 = arith.constant 0 : index
    %c0_1 = arith.constant 0 : index
    %0 = vector.load %arg1[%c0, %c0_0, %c0_1] : memref<1x16x256xf32, #tpu.memory_space<vmem>>, vector<1x16x256xf32>
    %cst = arith.constant dense<0.000000e+00> : vector<1x16xf32>
    %1 = vector.multi_reduction <add>, %0, %cst [2] : vector<1x16x256xf32> to vector<1x16xf32>
    %cst_2 = arith.constant 2.560000e+02 : f32
    %2 = vector.broadcast %cst_2 : f32 to vector<1x16xf32>
    %3 = arith.divf %1, %2 : vector<1x16xf32>
    %cst_3 = arith.constant dense<0xFF800000> : vector<1x16xf32>
    %4 = vector.multi_reduction <maximumf>, %0, %cst_3 [2] : vector<1x16x256xf32> to vector<1x16xf32>
    %5 = tpu.concatenate %3, %4 in 0 : vector<1x16xf32>, vector<1x16xf32> -> vector<2x16xf32>
    %c0_4 = arith.constant 0 : index
    %c0_5 = arith.constant 0 : index
    %6 = vector.load %arg2[%c0_4, %c0_5] : memref<16x2xf32, #tpu.memory_space<vmem>>, vector<16x2xf32>
    %cst_6 = arith.constant dense<0.000000e+00> : vector<2x2xf32>
    %7 = tpu.matmul %5, %6, %cst_6 {dimension_numbers = #tpu.dot_dimension_numbers<[1], [0], [0], [1], [0, 0, 1, 1], [], []>} : vector<2x16xf32>, vector<16x2xf32>, vector<2x2xf32> -> vector<2x2xf32>
    %cst_7 = arith.constant 0.000000e+00 : f32
    %8 = vector.broadcast %cst_7 : f32 to vector<2x2xf32>
    %9 = arith.maximumf %7, %8 : vector<2x2xf32>
    %c0_8 = arith.constant 0 : index
    %c0_9 = arith.constant 0 : index
    %10 = vector.load %arg3[%c0_8, %c0_9] : memref<2x16xf32, #tpu.memory_space<vmem>>, vector<2x16xf32>
    %cst_10 = arith.constant dense<0.000000e+00> : vector<2x16xf32>
    %11 = tpu.matmul %9, %10, %cst_10 {dimension_numbers = #tpu.dot_dimension_numbers<[1], [0], [0], [1], [0, 0, 1, 1], [], []>} : vector<2x2xf32>, vector<2x16xf32>, vector<2x16xf32> -> vector<2x16xf32>
    %12 = vector.extract_strided_slice %11 {offsets = [0, 0], sizes = [1, 16], strides = [1, 1]} : vector<2x16xf32> to vector<1x16xf32>
    %13 = vector.extract_strided_slice %11 {offsets = [1, 0], sizes = [1, 16], strides = [1, 1]} : vector<2x16xf32> to vector<1x16xf32>
    %14 = arith.addf %12, %13 : vector<1x16xf32>
    %15 = arith.negf %14 : vector<1x16xf32>
    %16 = math.exp %15 : vector<1x16xf32>
    %cst_11 = arith.constant 1.000000e+00 : f32
    %17 = vector.broadcast %cst_11 : f32 to vector<1x16xf32>
    %18 = arith.addf %17, %16 : vector<1x16xf32>
    %19 = arith.divf %17, %18 : vector<1x16xf32>
    %20 = vector.shape_cast %19 : vector<1x16xf32> to vector<1x16x1xf32>
    %21 = vector.broadcast %20 : vector<1x16x1xf32> to vector<1x16x256xf32>
    %22 = arith.mulf %0, %21 : vector<1x16x256xf32>
    %cst_12 = arith.constant dense<0.000000e+00> : vector<1x256xf32>
    %23 = vector.multi_reduction <add>, %22, %cst_12 [1] : vector<1x16x256xf32> to vector<1x256xf32>
    %cst_13 = arith.constant 1.600000e+01 : f32
    %24 = vector.broadcast %cst_13 : f32 to vector<1x256xf32>
    %25 = arith.divf %23, %24 : vector<1x256xf32>
    %cst_14 = arith.constant dense<0xFF800000> : vector<1x256xf32>
    %26 = vector.multi_reduction <maximumf>, %22, %cst_14 [1] : vector<1x16x256xf32> to vector<1x256xf32>
    %27 = tpu.concatenate %25, %26 in 1 : vector<1x256xf32>, vector<1x256xf32> -> vector<1x512xf32>
    %c0_15 = arith.constant 0 : index
    %c0_16 = arith.constant 0 : index
    %28 = vector.load %arg4[%c0_15, %c0_16] : memref<512x256xf32, #tpu.memory_space<vmem>>, vector<512x256xf32>
    %cst_17 = arith.constant dense<0.000000e+00> : vector<1x256xf32>
    %29 = tpu.matmul %27, %28, %cst_17 {dimension_numbers = #tpu.dot_dimension_numbers<[1], [0], [0], [1], [0, 0, 1, 1], [], []>} : vector<1x512xf32>, vector<512x256xf32>, vector<1x256xf32> -> vector<1x256xf32>
    %30 = arith.negf %29 : vector<1x256xf32>
    %31 = math.exp %30 : vector<1x256xf32>
    %cst_18 = arith.constant 1.000000e+00 : f32
    %32 = vector.broadcast %cst_18 : f32 to vector<1x256xf32>
    %33 = arith.addf %32, %31 : vector<1x256xf32>
    %34 = arith.divf %32, %33 : vector<1x256xf32>
    %35 = vector.shape_cast %34 : vector<1x256xf32> to vector<1x1x256xf32>
    %36 = vector.broadcast %35 : vector<1x1x256xf32> to vector<1x16x256xf32>
    %37 = arith.mulf %22, %36 : vector<1x16x256xf32>
    %c0_19 = arith.constant 0 : index
    %c0_20 = arith.constant 0 : index
    %c0_21 = arith.constant 0 : index
    %38 = vector.load %arg5[%c0_19, %c0_20, %c0_21] : memref<1x16x256xf32, #tpu.memory_space<vmem>>, vector<1x16x256xf32>
    tpu.vector_store %arg5[%c0_19, %c0_20, %c0_21], %37 {strides = array<i32>} : memref<1x16x256xf32, #tpu.memory_space<vmem>>, vector<1x16x256xf32>,
    return
  }
  func.func @transform_0(%arg0: i32) -> (i32, i32, i32) {
    %c0_i32 = arith.constant 0 : i32
    %c0_i32_0 = arith.constant 0 : i32
    %c0_i32_1 = arith.constant 0 : i32
    return %arg0, %c0_i32, %c0_i32_0 : i32, i32, i32
  }
  func.func @transform_1(%arg0: i32) -> (i32, i32) {
    %c0_i32 = arith.constant 0 : i32
    %c0_i32_0 = arith.constant 0 : i32
    %c0_i32_1 = arith.constant 0 : i32
    return %c0_i32, %c0_i32_0 : i32, i32
  }
  func.func @transform_2(%arg0: i32) -> (i32, i32) {
    %c0_i32 = arith.constant 0 : i32
    %c0_i32_0 = arith.constant 0 : i32
    %c0_i32_1 = arith.constant 0 : i32
    return %c0_i32, %c0_i32_0 : i32, i32
  }
  func.func @transform_3(%arg0: i32) -> (i32, i32) {
    %c0_i32 = arith.constant 0 : i32
    %c0_i32_0 = arith.constant 0 : i32
    %c0_i32_1 = arith.constant 0 : i32
    return %c0_i32, %c0_i32_0 : i32, i32
  }
  func.func @transform_4(%arg0: i32) -> (i32, i32, i32) {
    %c0_i32 = arith.constant 0 : i32
    %c0_i32_0 = arith.constant 0 : i32
    %c0_i32_1 = arith.constant 0 : i32
    return %arg0, %c0_i32, %c0_i32_0 : i32, i32, i32
  }
}

</mosaic_0001>

<bundles_post_ra>
// kernel: tpu_custom_call.1
= control target key start
LH: loop header
LB: loop body
LE: loop exit
PB: predicated region body
PF: predicated region fallthrough
CT: control target
= control target key end

     0   :  { %9 = vsyncpa [#allocation3], 0  ;;  %s1557_s0 = inlined_call_operand.hbm [shape: f32[2,16,256], index: 0, kind: input, shape index: {}]   ;;  %s1558_s1 = inlined_call_operand.vmem [shape: f32[16,2], index: 1, kind: input, shape index: {}]   ;;  %s1559_s2 = inlined_call_operand.vmem [shape: f32[2,16], index: 2, kind: input, shape index: {}]   ;;  %s1560_s3 = inlined_call_operand.hbm [shape: f32[512,256], index: 3, kind: input, shape index: {}]   ;;  %s1561_s4 = inlined_call_operand.hbm [shape: f32[2,16,256], index: 4, kind: output, shape index: {}]  }
   0x1   :  { %11 = vsyncpa [#allocation3 + $0x1], 0 }
   0x2   :  { %12 = vsyncpa [#allocation6], 0 }
   0x3   :  { %13 = vsyncpa [#allocation4], 0 }
   0x4   :  { %15 = vsyncpa [#allocation4 + $0x1], 0  ;;  %s1302_s15 = smov 0   ;;  %s1304_s16 = smov 0  }
   0x5   :  { %s1306_s17 = smov 0   ;;  %s1308_s18 = smov 0  }
   0x6 LB: > { %s1323_s19 = sadd.s32 4294967295, %s1265_s18   ;;  %s887_s20 = sadd.s32 4294967294, %s1265_s18   ;;  %s1265_s18 = sphi %s1308_s18, %s1581_s18   ;;  %s1261_s17 = sphi %s1306_s17, %s1580_s17   ;;  %s1257_s16 = sphi %s1304_s16, %s1579_s16   ;;  %s1253_s15 = sphi %s1302_s15, %s1578_s15  }
   0x7   : > { %p41_p0 = scmp.ne.s32.totalorder %s1257_s16, %s1253_s15  ;;  %p1562_p1 = scmp.eq.s32.totalorder %s1323_s19, 0 }
   0x8   : > { %p134_p3 = scmp.eq.s32.totalorder %s887_s20, 1  ;;  %p888_p5 = scmp.ge.s32.totalorder %s1265_s18, 1 }
   0x9   : > { %p1332_p4 = por %p1562_p1, %p41_p0  ;;  %p141_p7 = scmp.lt.s32.totalorder %s1265_s18, 3 }
   0xa   : > { %p1337_p6 = por %p134_p3, %p41_p0  ;;  %s1267_s24 = smov [#allocation5]  }
   0xb   : > { %s1565_s21 = scalar_select %p1332_p4, 1, 0 }
   0xc   : > { %s1566_s22 = scalar_select %p1337_p6, 1, 0 }
   0xd   : > { %p1342_p8 = pnand %p888_p5, %p141_p7  ;;  %s159_s25 = sshll.u32 %s1267_s24, 4  ;;  %s1346_s25 = int_to_ptr.vmem [resolvable:$true] %s159_s25 }
   0xe   : > { %s1358_s27 = sadd.s32 1, %s1265_s18   ;;  %s28_s28 = sadd.s32 1, %s1261_s17 }
   0xf   : > { %s1567_s23 = scalar_select %p1342_p8, 1, 0 }
  0x10   : > { %p1069_p9 = pneg %p1342_p8  ;;  %s25_s29 = ssub.s32 %s1265_s18, %s1358_s27 }
  0x11   : > { %s1137_s6 = scalar_lea.hbm %s1560_s3, 16384 }
  0x12   : > { %p1353_p11 = pnand %p1069_p9, %p1562_p1  ;;  %p1138_p12 = scmp.ne.s32.totalorder %s1560_s3, %s1137_s6 }
  0x13   : > { %p1144_p5 = scmp.lt.u32.totalorder %s1137_s6, %s1560_s3 }
  0x14   : > { %p1139_p13 = pneg %p1353_p11 }
  0x16   : > { %p1140_p0 = pnand %p1139_p13, %p1138_p12 }
  0x18   : > { %p1141_p3 = pneg %p1140_p0 }
  0x1a   : > { %p1146_p7 = pnand %p1144_p5, %p1141_p3 }
  0x1c   : > { %1149 = shalt.err (!%p1146_p7)
}
  0x1d   : > { %s1150_s11 = scalar_lea.vmem %s1346_s25, 16384  ;;  %p1158_p2 = scmp.lt.s32.totalorder %s1346_s25, %s1346_s25 }
  0x1e   : > { %p1151_p9 = scmp.ne.s32.totalorder %s1346_s25, %s1150_s11  ;;  %p1159_p6 = scmp.lt.s32.totalorder %s1150_s11, %s1150_s11 }
  0x20   : > { %p1153_p10 = pnand %p1151_p9, %p1139_p13  ;;  %p1160_p4 = por %p1159_p6, %p1158_p2 }
  0x22   : > { %p1154_p1 = pneg %p1153_p10 }
  0x24   : > { %p1161_p8 = pnand %p1160_p4, %p1154_p1 }
  0x26   : > { %1164 = shalt.err (!%p1161_p8)
}
  0x27   : > { %s1268_s12 = smov 256   ;;  %s1269_s13 = smov 16  }
  0x28   : > { %1072 = dma.hbm_to_vmem [thread:$0]  (!%p1353_p11), %s1560_s3, 16384, %s1346_s25, [#allocation6], %s1268_s12, %s1268_s12, %s1269_s13  }
  0x29   : > { %p26_p1 = scmp.eq.s32.totalorder %s25_s29, 0  ;;  %p35_p2 = scmp.ne.s32.totalorder %s1261_s17, %s1257_s16 }
  0x2a   : > { %p36_p4 = scmp.eq.s32.totalorder %s1265_s18, 0  ;;  %p1082_p6 = scmp.lt.s32.totalorder %s1265_s18, 2 }
  0x2b   : > { %s1392_s24 = scalar_select %p26_p1, %s1261_s17, %s28_s28  }
  0x2c   : > { %p37_p8 = por %p36_p4, %p35_p2  ;;  %p1569_p10 = scmp.eq.s32.totalorder %s1323_s19, 1 }
  0x2d   : > { %s173_s26 = sand.u32 1, %s1261_s17   ;;  %s909_s5 = sshll.u32 %s1265_s18, 9 }
  0x2e   : > { %p1396_p12 = por %p1569_p10, %p35_p2  ;;  %s891_s6 = sshll.u32 %s173_s26, 5 }
  0x2f   : > { %s1405_s9 = scalar_lea.hbm %s1557_s0, %s909_s5  ;;  %s177_s25 = scalar_lea.vmem [#allocation2], %s891_s6 }
  0x30   : > { %s184_s28 = sshll.u32 %s177_s25, 4  ;;  %p1407_p11 = pnand %p1082_p6, %p37_p8  ;;  %s1411_s28 = int_to_ptr.vmem [resolvable:$true] %s184_s28 }
  0x31   : > { %s1413_s10 = scalar_lea.sflag [#allocation3], %s173_s26  ;;  %s1165_s11 = scalar_lea.hbm %s1405_s9, 512 }
  0x32   : > { %p1166_p13 = scmp.ne.s32.totalorder %s1405_s9, %s1165_s11  ;;  %p1167_p0 = pneg %p1407_p11 }
  0x33   : > { %s1170_s5 = scalar_lea.hbm %s1557_s0, 1024  ;;  %p1171_p7 = scmp.lt.u32.totalorder %s1405_s9, %s1557_s0 }
  0x34   : > { %p1168_p3 = pnand %p1167_p0, %p1166_p13  ;;  %p1172_p9 = scmp.lt.u32.totalorder %s1170_s5, %s1165_s11 }
  0x35   : > { %p1174_p2 = scmp.lt.u32.totalorder %s1165_s11, %s1405_s9 }
  0x36   : > { %p1169_p5 = pneg %p1168_p3  ;;  %p1173_p1 = por %p1172_p9, %p1171_p7 }
  0x38   : > { %p1175_p4 = por %p1174_p2, %p1173_p1 }
  0x3a   : > { %p1176_p6 = pnand %p1175_p4, %p1169_p5 }
  0x3c   : > { %1179 = shalt.err (!%p1176_p6)
}
  0x3d   : > { %s1180_s26 = scalar_lea.vmem %s1411_s28, 512  ;;  %s1270_s8 = smov [#allocation2]  }
  0x3e   : > { %p1181_p8 = scmp.ne.s32.totalorder %s1411_s28, %s1180_s26  ;;  %s1185_s25 = sshll.u32 %s1270_s8, 4  ;;  %s1186_s25 = int_to_ptr.vmem [resolvable:$false] %s1185_s25 }
  0x3f   : > { %s1187_s14 = scalar_lea.vmem %s1186_s25, 1024  ;;  %p1188_p3 = scmp.lt.s32.totalorder %s1411_s28, %s1186_s25 }
  0x40   : > { %p1183_p10 = pnand %p1181_p8, %p1167_p0  ;;  %p1189_p7 = scmp.lt.s32.totalorder %s1187_s14, %s1180_s26 }
  0x42   : > { %p1184_p13 = pneg %p1183_p10  ;;  %p1190_p9 = por %p1189_p7, %p1188_p3 }
  0x44   : > { %p1191_p1 = pnand %p1190_p9, %p1184_p13 }
  0x46   : > { %1194 = shalt.err (!%p1191_p1)
}
  0x47   : > { %1076 = dma.hbm_to_vmem [thread:$0]  (!%p1407_p11), %s1405_s9, 512, %s1411_s28, %s1413_s10, %s1268_s12, %s1268_s12, %s1269_s13  }
  0x48   : > { %p1572_p0 = scmp.ne.s32.totalorder %s1567_s23, 0 }
  0x49   : > { %s1447_s11 = sand.u32 (!%p1572_p0), 1, %s1257_s16   ;;  %p1573_p5 = scmp.ne.s32.totalorder (!%p1572_p0), %s1565_s21, 0 }
  0x4a   : > { %196 = sbr.rel (%p1572_p0) target bundleno = 1092 (0x444), region = 36  ;;  %s895_s20 = sshll.u32 (!%p1572_p0), %s1447_s11, 5 }
  0x4b   : > { %s199_s5 = scalar_lea.sflag (!%p1572_p0), [#allocation3], %s1447_s11  ;;  %s202_s29 = scalar_lea.vmem (!%p1572_p0), [#allocation2], %s895_s20 }
  0x51   : > { %1240 = dma.done.wait (%p1573_p5), %s199_s5, 512  }
  0x52   : > { %1242 = vsyncadd (%p1573_p5), %s199_s5, 4294966784  ;;  %p1574_p11 = scmp.eq.s32.totalorder %s1323_s19, 0 }
  0x54   : > { %1244 = dma.done.wait (%p1574_p11), [#allocation6], 16384   ;;  %p1575_p2 = pmov %p1574_p11 }
  0x55   : > { %v1461_v0 = vld [vmem:[%s202_s29] sm:$0xff]  ;;  %v1463_v1 = vld [vmem:[%s202_s29 + $0x8] sm:$0xff]  ;;  %v1465_v2 = vld [vmem:[%s202_s29 + $0x10] sm:$0xff]  ;;  %v1271_v11 = vmov 0.0|0.0   ;;  %vm1272_vm0 = vmmov 0   ;;  %v1273_v12 = vmov 0.0   ;;  %v252_v13 = vlaneseq }
  0x56   : > { %1246 = vsyncadd (%p1575_p2), [#allocation6], 4294950912  ;;  %v244_v3 = vmax.f32 %v1461_v0, %v1463_v1  ;;  %v235_v4 = vadd.f32 %v1463_v1, %v1461_v0  ;;  %v1471_v5 = vld [vmem:[%s202_s29 + $0x18] sm:$0xff]  ;;  %v280_v8 = vld [vmem:[%s1558_s1] sm:$0xff]  ;;  %928 = vmatprep.subr.bf16.mxu0 %v1271_v11  ;;  %920 = vmatprep.mubr.msk.f32.mxu0 %vm1272_vm0, %v1273_v12  ;;  %vm263_vm1 = vcmask 130112   ;;  %vm278_vm2 = vcmask 1040384  }
  0x57   : > { %v247_v6 = vmax.f32 %v1465_v2, %v1471_v5  ;;  %v238_v7 = vadd.f32 %v1471_v5, %v1465_v2  ;;  %v281_v9 = vld [vmem:[%s1558_s1 + $0x8] sm:$0xff]  ;;  %923 = vmatprep.subr.mxu1 %v1273_v12  ;;  %925 = vmatprep.mubr.msk.f32.mxu1 %vm1272_vm0, %v1273_v12  ;;  %v253_v14 = vand.u32 127, %v252_v13  ;;  %v1483_v16 = vshrl.u32 %v252_v13, 7  ;;  %v357_v32 = vld [vmem:[%s1559_s2] sm:$0x3]  ;;  %v559_v37 = vld [vmem:[#allocation5 + $0x218] sm:$0xff] }
  0x58   : > { %245 = vmax.xlane.f32.xlu1 %v244_v3  ;;  %236 = vadd.xlane.f32.xlu0 %v235_v4  ;;  %v929_v10 = vpack.c.bf16 %v281_v9, %v280_v8  ;;  %vm282_vm3 = vcmask 130048   ;;  %vm362_vm4 = vcmask 1041408   ;;  %vm358_vm5 = vcmask 15360   ;;  %v557_v36 = vld [vmem:[#allocation5 + $0x208] sm:$0xff]  ;;  %v556_v38 = vld [vmem:[#allocation5 + $0x200] sm:$0xff]  ;;  %v558_v40 = vld [vmem:[#allocation5 + $0x210] sm:$0xff] }
  0x59   : > { %v258_v15 = vadd.s32 4294967288, %v253_v14  ;;  %v256_v20 = vsub.s32 %v253_v14, %v1483_v16  ;;  %924 = vmatpush3.msk.msra.mxu1 %vm362_vm4, %v357_v32  ;;  %v995_v39 = vpack.c.bf16 %v559_v37, %v557_v36  ;;  %v493_v41 = vld [vmem:[#allocation5 + $0x8] sm:$0xff]  ;;  %v495_v42 = vld [vmem:[#allocation5 + $0x18] sm:$0xff]  ;;  %v997_v43 = vpack.c.bf16 %v558_v40, %v556_v38  ;;  %v492_v45 = vld [vmem:[#allocation5] sm:$0xff]  ;;  %s910_s10 = sshll.u32 %s1323_s19, 9  ;;  %s230_s6 = scalar_lea.vmem [#allocation7], %s895_s20 }
  0x5a   : > { %930 = vmatpush3.bf16.msra.mxu0 %v929_v10  ;;  %v931_v44 = vpack.c.bf16 %v495_v42, %v493_v41  ;;  %v494_v46 = vld [vmem:[#allocation5 + $0x10] sm:$0xff]  ;;  %v561_v47 = vld [vmem:[#allocation5 + $0x228] sm:$0xff]  ;;  %v563_v49 = vld [vmem:[#allocation5 + $0x238] sm:$0xff]  ;;  %s804_s7 = sshll.u32 %s230_s6, 4  ;;  %s1510_s25 = scalar_lea.hbm %s1561_s4, %s910_s10  ;;  %s1512_s7 = int_to_ptr.vmem [resolvable:$true] %s804_s7 }
  0x5b   : > { %v261_v19 = vsub.s32 %v258_v15, %v1483_v16  ;;  %996 = vmatprep.subr.bf16.mxu1 %v995_v39  ;;  %v933_v48 = vpack.c.bf16 %v494_v46, %v492_v45  ;;  %v560_v50 = vld [vmem:[#allocation5 + $0x220] sm:$0xff]  ;;  %v562_v51 = vld [vmem:[#allocation5 + $0x230] sm:$0xff]  ;;  %v999_v52 = vpack.c.bf16 %v563_v49, %v561_v47  ;;  %v497_v54 = vld [vmem:[#allocation5 + $0x28] sm:$0xff]  ;;  %s791_s19 = scalar_lea.sflag [#allocation4], %s1447_s11  ;;  %s1195_s14 = scalar_lea.vmem %s1512_s7, 512 }
  0x5c   : > { %248 = vmax.xlane.f32.xlu1 %v247_v6  ;;  %239 = vadd.xlane.f32.xlu0 %v238_v7  ;;  %v1001_v53 = vpack.c.bf16 %v562_v51, %v560_v50  ;;  %v499_v55 = vld [vmem:[#allocation5 + $0x38] sm:$0xff]  ;;  %v496_v56 = vld [vmem:[#allocation5 + $0x20] sm:$0xff]  ;;  %v498_v58 = vld [vmem:[#allocation5 + $0x30] sm:$0xff]  ;;  %p1196_p4 = scmp.ne.s32.totalorder %s1512_s7, %s1195_s14  ;;  %s1274_s20 = smov [#allocation7]  }
  0x5d   : > { %932 = vmatprep.subr.bf16.mxu0 %v931_v44  ;;  %v935_v57 = vpack.c.bf16 %v499_v55, %v497_v54  ;;  %v565_v59 = vld [vmem:[#allocation5 + $0x248] sm:$0xff]  ;;  %v567_v60 = vld [vmem:[#allocation5 + $0x258] sm:$0xff]  ;;  %v937_v61 = vpack.c.bf16 %v498_v58, %v496_v56  ;;  %v564_v63 = vld [vmem:[#allocation5 + $0x240] sm:$0xff]  ;;  %s1199_s5 = sshll.u32 %s1274_s20, 4  ;;  %s1200_s5 = int_to_ptr.vmem [resolvable:$false] %s1199_s5 }
  0x5e   : > { %v1003_v62 = vpack.c.bf16 %v567_v60, %v565_v59  ;;  %v566_v3 = vld [vmem:[#allocation5 + $0x250] sm:$0xff]  ;;  %v501_v4 = vld [vmem:[#allocation5 + $0x48] sm:$0xff]  ;;  %v503_v6 = vld [vmem:[#allocation5 + $0x58] sm:$0xff]  ;;  %p1197_p6 = pnand %p1196_p4, %p1396_p12  ;;  %s1201_s29 = scalar_lea.vmem %s1200_s5, 1024 }
  0x5f   : > { %v500_v7 = vld [vmem:[#allocation5 + $0x40] sm:$0xff]  ;;  %v502_v8 = vld [vmem:[#allocation5 + $0x50] sm:$0xff]  ;;  %v1005_v9 = vpack.c.bf16 %v566_v3, %v564_v63  ;;  %v939_v10 = vpack.c.bf16 %v503_v6, %v501_v4  ;;  %v569_v11 = vld [vmem:[#allocation5 + $0x268] sm:$0xff]  ;;  %p1202_p10 = scmp.lt.s32.totalorder %s1512_s7, %s1200_s5  ;;  %p1203_p13 = scmp.lt.s32.totalorder %s1201_s29, %s1195_s14 }
  0x60   : > { %v571_v12 = vld [vmem:[#allocation5 + $0x278] sm:$0xff]  ;;  %v568_v13 = vld [vmem:[#allocation5 + $0x260] sm:$0xff]  ;;  %v941_v14 = vpack.c.bf16 %v502_v8, %v500_v7  ;;  %v513_v37 = vld [vmem:[#allocation5 + $0xa8] sm:$0xff]  ;;  %p1198_p8 = pneg %p1197_p6 }
  0x61   : > { %v1007_v15 = vpack.c.bf16 %v571_v12, %v569_v11  ;;  %v508_v32 = vld [vmem:[#allocation5 + $0x80] sm:$0xff]  ;;  %v579_v36 = vld [vmem:[#allocation5 + $0x2b8] sm:$0xff]  ;;  %v514_v46 = vld [vmem:[#allocation5 + $0xb0] sm:$0xff]  ;;  %p1204_p3 = por %p1203_p13, %p1202_p10 }
  0x62   : > { %v515_v38 = vld [vmem:[#allocation5 + $0xb8] sm:$0xff]  ;;  %v576_v42 = vld [vmem:[#allocation5 + $0x2a0] sm:$0xff]  ;;  %v581_v47 = vld [vmem:[#allocation5 + $0x2c8] sm:$0xff] }
  0x63   : > { %v512_v44 = vld [vmem:[#allocation5 + $0xa0] sm:$0xff]  ;;  %v951_v45 = vpack.c.bf16 %v515_v38, %v513_v37  ;;  %v517_v49 = vld [vmem:[#allocation5 + $0xc8] sm:$0xff]  ;;  %v519_v50 = vld [vmem:[#allocation5 + $0xd8] sm:$0xff]  ;;  %p1205_p7 = pnand %p1204_p3, %p1198_p8 }
  0x64   : > { %v580_v54 = vld [vmem:[#allocation5 + $0x2c0] sm:$0xff]  ;;  %v582_v55 = vld [vmem:[#allocation5 + $0x2d0] sm:$0xff]  ;;  %v585_v59 = vld [vmem:[#allocation5 + $0x2e8] sm:$0xff] }
  0x65   : > { %v516_v56 = vld [vmem:[#allocation5 + $0xc0] sm:$0xff]  ;;  %v518_v58 = vld [vmem:[#allocation5 + $0xd0] sm:$0xff]  ;;  %v587_v60 = vld [vmem:[#allocation5 + $0x2f8] sm:$0xff]  ;;  %v1021_v63 = vpack.c.bf16 %v582_v55, %v580_v54 }
  0x66   : > { %v957_v3 = vpack.c.bf16 %v518_v58, %v516_v56  ;;  %v1023_v4 = vpack.c.bf16 %v587_v60, %v585_v59  ;;  %v584_v6 = vld [vmem:[#allocation5 + $0x2e0] sm:$0xff]  ;;  %v586_v7 = vld [vmem:[#allocation5 + $0x2f0] sm:$0xff]  ;;  %v589_v11 = vld [vmem:[#allocation5 + $0x308] sm:$0xff] }
  0x67   : > { %v520_v8 = vld [vmem:[#allocation5 + $0xe0] sm:$0xff]  ;;  %v591_v12 = vld [vmem:[#allocation5 + $0x318] sm:$0xff]  ;;  %v533_v38 = vld [vmem:[#allocation5 + $0x148] sm:$0xff] }
  0x68   : > { %v599_v37 = vld [vmem:[#allocation5 + $0x358] sm:$0xff]  ;;  %v600_v55 = vld [vmem:[#allocation5 + $0x360] sm:$0xff]  ;;  %v602_v56 = vld [vmem:[#allocation5 + $0x370] sm:$0xff] }
  0x69   : > { %v1041_v58 = vpack.c.bf16 %v602_v56, %v600_v55 }
  0xe5   : > { %v246_v17 = vpop.xlane.xlu1 %245  ;;  %v237_v18 = vpop.xlane.xlu0 %236 }
  0xe6   : > { %v242_v21 = vmul.f32 0.00390625, %v237_v18  ;;  %v271_v26 = vrot.slane %v246_v17, %v256_v20  ;;  %v570_v17 = vld [vmem:[#allocation5 + $0x270] sm:$0xff]  ;;  %v505_v18 = vld [vmem:[#allocation5 + $0x68] sm:$0xff] }
  0xe8   : > { %v257_v27 = vrot.slane %v242_v21, %v256_v20  ;;  %v504_v21 = vld [vmem:[#allocation5 + $0x60] sm:$0xff] }
  0xe9   : > { %v249_v22 = vpop.xlane.xlu1 %248  ;;  %v240_v23 = vpop.xlane.xlu0 %239 }
  0xea   : > { %v275_v24 = vrot.slane %v249_v22, %v261_v19  ;;  %v243_v25 = vmul.f32 0.00390625, %v240_v23  ;;  %v506_v22 = vld [vmem:[#allocation5 + $0x70] sm:$0xff]  ;;  %v573_v23 = vld [vmem:[#allocation5 + $0x288] sm:$0xff] }
  0xec   : > { %v262_v28 = vrot.slane %v243_v25, %v261_v19  ;;  %v276_v29 = vsel %vm263_vm1, %v275_v24, %v271_v26  ;;  %v507_v19 = vld [vmem:[#allocation5 + $0x78] sm:$0xff]  ;;  %v1009_v25 = vpack.c.bf16 %v570_v17, %v568_v13  ;;  %v509_v26 = vld [vmem:[#allocation5 + $0x88] sm:$0xff] }
  0xed   : > { %v943_v20 = vpack.c.bf16 %v507_v19, %v505_v18  ;;  %v575_v24 = vld [vmem:[#allocation5 + $0x298] sm:$0xff]  ;;  %v525_v13 = vld [vmem:[#allocation5 + $0x108] sm:$0xff]  ;;  %v1027_v18 = vpack.c.bf16 %v591_v12, %v589_v11  ;;  %v588_v19 = vld [vmem:[#allocation5 + $0x300] sm:$0xff] }
  0xee   : > { %v264_v30 = vsel %vm263_vm1, %v262_v28, %v257_v27  ;;  %v511_v27 = vld [vmem:[#allocation5 + $0x98] sm:$0xff]  ;;  %v945_v28 = vpack.c.bf16 %v506_v22, %v504_v21  ;;  %v524_v21 = vld [vmem:[#allocation5 + $0x100] sm:$0xff] }
  0xef   : > { %v279_v31 = vsel %vm278_vm2, %v264_v30, %v276_v29  ;;  %v1011_v29 = vpack.c.bf16 %v575_v24, %v573_v23  ;;  %v572_v30 = vld [vmem:[#allocation5 + $0x280] sm:$0xff]  ;;  %v526_v23 = vld [vmem:[#allocation5 + $0x110] sm:$0xff]  ;;  %v593_v24 = vld [vmem:[#allocation5 + $0x328] sm:$0xff] }
  0xf0   : > { %921 = vmatmul.mubr.msk.f32.vlgmr.msra.gmra.mrb[0].mxu0 %vm282_vm3, %v279_v31  ;;  %v574_v31 = vld [vmem:[#allocation5 + $0x290] sm:$0xff]  ;;  %v604_v12 = vld [vmem:[#allocation5 + $0x380] sm:$0xff] }
  0xf1   : > { %934 = vmatpush1.bf16.msra.mxu0 %v933_v48  ;;  %v1013_v39 = vpack.c.bf16 %v574_v31, %v572_v30  ;;  %v583_v48 = vld [vmem:[#allocation5 + $0x2d8] sm:$0xff]  ;;  %v592_v31 = vld [vmem:[#allocation5 + $0x320] sm:$0xff] }
  0xf2   : > { %936 = vmatprep.subr.bf16.mxu0 %v935_v57  ;;  %v955_v57 = vpack.c.bf16 %v519_v50, %v517_v49  ;;  %v603_v49 = vld [vmem:[#allocation5 + $0x378] sm:$0xff]  ;;  %v537_v50 = vld [vmem:[#allocation5 + $0x168] sm:$0xff] }
  0xf5   : > { %938 = vmatpush1.bf16.msra.mxu0 %v937_v61  ;;  %v521_v61 = vld [vmem:[#allocation5 + $0xe8] sm:$0xff] }
  0xf6   : > { %940 = vmatprep.subr.bf16.mxu0 %v939_v10  ;;  %v522_v10 = vld [vmem:[#allocation5 + $0xf0] sm:$0xff] }
  0xf7   : > { %v961_v17 = vpack.c.bf16 %v522_v10, %v520_v8  ;;  %v607_v10 = vld [vmem:[#allocation5 + $0x398] sm:$0xff] }
  0xf9   : > { %942 = vmatpush1.bf16.msra.mxu0 %v941_v14  ;;  %v527_v14 = vld [vmem:[#allocation5 + $0x118] sm:$0xff] }
  0xfa   : > { %944 = vmatprep.subr.bf16.mxu0 %v943_v20  ;;  %v590_v20 = vld [vmem:[#allocation5 + $0x310] sm:$0xff]  ;;  %v963_v22 = vpack.c.bf16 %v527_v14, %v525_v13 }
  0xfb   : > { %v606_v13 = vld [vmem:[#allocation5 + $0x390] sm:$0xff] }
  0xfc   : > { %v1045_v14 = vpack.c.bf16 %v606_v13, %v604_v12 }
  0xfd   : > { %946 = vmatpush1.bf16.msra.mxu0 %v945_v28  ;;  %v1029_v28 = vpack.c.bf16 %v590_v20, %v588_v19  ;;  %v540_v19 = vld [vmem:[#allocation5 + $0x180] sm:$0xff]  ;;  %v542_v20 = vld [vmem:[#allocation5 + $0x190] sm:$0xff] }
 0x1c3   : > { %v352_v33 = vpop.f32.mrb[0].mxu0 }
 0x1c4   : > { %v356_v34 = vmax.f32 %v352_v33, 0.0  ;;  %v922_v35 = vpop.f32.mrb[1].mxu0  ;;  %v947_v33 = vpack.c.bf16 %v511_v27, %v509_v26  ;;  %v529_v26 = vld [vmem:[#allocation5 + $0x128] sm:$0xff]  ;;  %v531_v27 = vld [vmem:[#allocation5 + $0x138] sm:$0xff] }
 0x1c5   : > { %v577_v35 = vld [vmem:[#allocation5 + $0x2a8] sm:$0xff] }
 0x1c6   : > { %926 = vmatmul.mubr.msk.f32.vlgmr.msra.gmra.mrb[0].mxu1 %vm358_vm5, %v356_v34  ;;  %v510_v34 = vld [vmem:[#allocation5 + $0x90] sm:$0xff]  ;;  %v1015_v41 = vpack.c.bf16 %v579_v36, %v577_v35  ;;  %948 = vmatprep.subr.bf16.mxu0 %v947_v33  ;;  %v528_v33 = vld [vmem:[#allocation5 + $0x120] sm:$0xff]  ;;  %v597_v36 = vld [vmem:[#allocation5 + $0x348] sm:$0xff] }
 0x1c7   : > { %998 = vmatpush1.bf16.msra.mxu1 %v997_v43  ;;  %v949_v40 = vpack.c.bf16 %v510_v34, %v508_v32  ;;  %v578_v43 = vld [vmem:[#allocation5 + $0x2b0] sm:$0xff]  ;;  %v967_v34 = vpack.c.bf16 %v531_v27, %v529_v26 }
 0x1c8   : > { %1000 = vmatprep.subr.bf16.mxu1 %v999_v52  ;;  %v1017_v51 = vpack.c.bf16 %v578_v43, %v576_v42  ;;  %v953_v52 = vpack.c.bf16 %v514_v46, %v512_v44  ;;  %v594_v32 = vld [vmem:[#allocation5 + $0x330] sm:$0xff]  ;;  %v1035_v42 = vpack.c.bf16 %v599_v37, %v597_v36  ;;  %v596_v43 = vld [vmem:[#allocation5 + $0x340] sm:$0xff]  ;;  %v1491_v36 = vsub.s32 0, %v1483_v16 }
 0x1c9   : > { %950 = vmatpush1.bf16.msra.mxu0 %v949_v40  ;;  %v530_v35 = vld [vmem:[#allocation5 + $0x130] sm:$0xff]  ;;  %v1033_v40 = vpack.c.bf16 %v594_v32, %v592_v31  ;;  %v544_v31 = vld [vmem:[#allocation5 + $0x1a0] sm:$0xff] }
 0x1ca   : > { %952 = vmatprep.subr.bf16.mxu0 %v951_v45  ;;  %v598_v44 = vld [vmem:[#allocation5 + $0x350] sm:$0xff]  ;;  %v532_v45 = vld [vmem:[#allocation5 + $0x140] sm:$0xff] }
 0x1cb   : > { %1002 = vmatpush1.bf16.msra.mxu1 %v1001_v53  ;;  %v1019_v53 = vpack.c.bf16 %v583_v48, %v581_v47  ;;  %v534_v47 = vld [vmem:[#allocation5 + $0x150] sm:$0xff]  ;;  %v601_v48 = vld [vmem:[#allocation5 + $0x368] sm:$0xff] }
 0x1cc   : > { %1004 = vmatprep.subr.bf16.mxu1 %v1003_v62  ;;  %v523_v62 = vld [vmem:[#allocation5 + $0xf8] sm:$0xff]  ;;  %v1039_v54 = vpack.c.bf16 %v603_v49, %v601_v48  ;;  %v610_v26 = vld [vmem:[#allocation5 + $0x3b0] sm:$0xff]  ;;  %v617_v48 = vld [vmem:[#allocation5 + $0x3e8] sm:$0xff] }
 0x1cd   : > { %954 = vmatpush1.bf16.msra.mxu0 %v953_v52  ;;  %v1037_v52 = vpack.c.bf16 %v598_v44, %v596_v43  ;;  %v546_v32 = vld [vmem:[#allocation5 + $0x1b0] sm:$0xff]  ;;  %v548_v44 = vld [vmem:[#allocation5 + $0x1c0] sm:$0xff]  ;;  %v619_v49 = vld [vmem:[#allocation5 + $0x3f8] sm:$0xff] }
 0x1ce   : > { %956 = vmatprep.subr.bf16.mxu0 %v955_v57 }
 0x1cf   : > { %1006 = vmatpush1.bf16.msra.mxu1 %v1005_v9  ;;  %v959_v9 = vpack.c.bf16 %v523_v62, %v521_v61 }
 0x1d0   : > { %1008 = vmatprep.subr.bf16.mxu1 %v1007_v15  ;;  %v1025_v15 = vpack.c.bf16 %v586_v7, %v584_v6  ;;  %v538_v6 = vld [vmem:[#allocation5 + $0x170] sm:$0xff] }
 0x1d1   : > { %958 = vmatpush1.bf16.msra.mxu0 %v957_v3 }
 0x1d2   : > { %960 = vmatprep.subr.bf16.mxu0 %v959_v9  ;;  %v605_v9 = vld [vmem:[#allocation5 + $0x388] sm:$0xff] }
 0x1d3   : > { %1010 = vmatpush1.bf16.msra.mxu1 %v1009_v25  ;;  %v595_v25 = vld [vmem:[#allocation5 + $0x338] sm:$0xff]  ;;  %v1043_v11 = vpack.c.bf16 %v607_v10, %v605_v9 }
 0x1d4   : > { %1012 = vmatprep.subr.bf16.mxu1 %v1011_v29  ;;  %v965_v29 = vpack.c.bf16 %v526_v23, %v524_v21  ;;  %v1031_v30 = vpack.c.bf16 %v595_v25, %v593_v24  ;;  %v981_v21 = vpack.c.bf16 %v542_v20, %v540_v19  ;;  %v611_v23 = vld [vmem:[#allocation5 + $0x3b8] sm:$0xff]  ;;  %v608_v25 = vld [vmem:[#allocation5 + $0x3a0] sm:$0xff] }
 0x1d5   : > { %962 = vmatpush1.bf16.msra.mxu0 %v961_v17  ;;  %v543_v17 = vld [vmem:[#allocation5 + $0x198] sm:$0xff]  ;;  %v1049_v27 = vpack.c.bf16 %v610_v26, %v608_v25 }
 0x1d6   : > { %964 = vmatprep.subr.bf16.mxu0 %v963_v22  ;;  %v609_v22 = vld [vmem:[#allocation5 + $0x3a8] sm:$0xff] }
 0x1d7   : > { %1014 = vmatpush1.bf16.msra.mxu1 %v1013_v39  ;;  %v535_v39 = vld [vmem:[#allocation5 + $0x158] sm:$0xff]  ;;  %v1047_v24 = vpack.c.bf16 %v611_v23, %v609_v22 }
 0x1d8   : > { %1016 = vmatprep.subr.bf16.mxu1 %v1015_v41  ;;  %v969_v41 = vpack.c.bf16 %v530_v35, %v528_v33  ;;  %v971_v46 = vpack.c.bf16 %v535_v39, %v533_v38  ;;  %v985_v33 = vpack.c.bf16 %v546_v32, %v544_v31  ;;  %v615_v35 = vld [vmem:[#allocation5 + $0x3d8] sm:$0xff]  ;;  %v612_v38 = vld [vmem:[#allocation5 + $0x3c0] sm:$0xff]  ;;  %v614_v39 = vld [vmem:[#allocation5 + $0x3d0] sm:$0xff] }
 0x1d9   : > { %966 = vmatpush1.bf16.msra.mxu0 %v965_v29  ;;  %v547_v29 = vld [vmem:[#allocation5 + $0x1b8] sm:$0xff] }
 0x1da   : > { %968 = vmatprep.subr.bf16.mxu0 %v967_v34  ;;  %v613_v34 = vld [vmem:[#allocation5 + $0x3c8] sm:$0xff] }
 0x1db   : > { %1018 = vmatpush1.bf16.msra.mxu1 %v1017_v51  ;;  %v539_v51 = vld [vmem:[#allocation5 + $0x178] sm:$0xff]  ;;  %v1051_v37 = vpack.c.bf16 %v615_v35, %v613_v34 }
 0x1dc   : > { %1020 = vmatprep.subr.bf16.mxu1 %v1019_v53  ;;  %v973_v53 = vpack.c.bf16 %v534_v47, %v532_v45  ;;  %v975_v57 = vpack.c.bf16 %v539_v51, %v537_v50  ;;  %v550_v45 = vld [vmem:[#allocation5 + $0x1d0] sm:$0xff]  ;;  %v616_v50 = vld [vmem:[#allocation5 + $0x3e0] sm:$0xff]  ;;  %v1055_v51 = vpack.c.bf16 %v619_v49, %v617_v48 }
 0x1dd   : > { %970 = vmatpush1.bf16.msra.mxu0 %v969_v41  ;;  %v549_v41 = vld [vmem:[#allocation5 + $0x1c8] sm:$0xff]  ;;  %v989_v47 = vpack.c.bf16 %v550_v45, %v548_v44 }
 0x1de   : > { %972 = vmatprep.subr.bf16.mxu0 %v971_v46 }
 0x1df   : > { %1022 = vmatpush1.bf16.msra.mxu1 %v1021_v63 }
 0x1e0   : > { %1024 = vmatprep.subr.bf16.mxu1 %v1023_v4  ;;  %v536_v4 = vld [vmem:[#allocation5 + $0x160] sm:$0xff] }
 0x1e1   : > { %974 = vmatpush1.bf16.msra.mxu0 %v973_v53  ;;  %v977_v8 = vpack.c.bf16 %v538_v6, %v536_v4  ;;  %v553_v53 = vld [vmem:[#allocation5 + $0x1e8] sm:$0xff] }
 0x1e2   : > { %976 = vmatprep.subr.bf16.mxu0 %v975_v57  ;;  %v552_v57 = vld [vmem:[#allocation5 + $0x1e0] sm:$0xff] }
 0x1e3   : > { %1026 = vmatpush1.bf16.msra.mxu1 %v1025_v15  ;;  %v541_v15 = vld [vmem:[#allocation5 + $0x188] sm:$0xff] }
 0x1e4   : > { %1028 = vmatprep.subr.bf16.mxu1 %v1027_v18  ;;  %v979_v18 = vpack.c.bf16 %v543_v17, %v541_v15 }
 0x1e5   : > { %978 = vmatpush1.bf16.msra.mxu0 %v977_v8 }
 0x1e6   : > { %980 = vmatprep.subr.bf16.mxu0 %v979_v18 }
 0x1e7   : > { %1030 = vmatpush1.bf16.msra.mxu1 %v1029_v28  ;;  %v545_v28 = vld [vmem:[#allocation5 + $0x1a8] sm:$0xff] }
 0x1e8   : > { %1032 = vmatprep.subr.bf16.mxu1 %v1031_v30  ;;  %v983_v30 = vpack.c.bf16 %v547_v29, %v545_v28 }
 0x1e9   : > { %982 = vmatpush1.bf16.msra.mxu0 %v981_v21 }
 0x1ea   : > { %984 = vmatprep.subr.bf16.mxu0 %v983_v30 }
 0x1eb   : > { %1034 = vmatpush1.bf16.msra.mxu1 %v1033_v40  ;;  %v1053_v40 = vpack.c.bf16 %v614_v39, %v612_v38 }
 0x1ec   : > { %1036 = vmatprep.subr.bf16.mxu1 %v1035_v42  ;;  %v551_v42 = vld [vmem:[#allocation5 + $0x1d8] sm:$0xff] }
 0x1ed   : > { %986 = vmatpush1.bf16.msra.mxu0 %v985_v33  ;;  %v987_v43 = vpack.c.bf16 %v551_v42, %v549_v41 }
 0x1ef   : > { %1038 = vmatpush1.bf16.msra.mxu1 %v1037_v52  ;;  %988 = vmatprep.subr.bf16.mxu0 %v987_v43  ;;  %v618_v52 = vld [vmem:[#allocation5 + $0x3f0] sm:$0xff] }
 0x1f0   : > { %1040 = vmatprep.subr.bf16.mxu1 %v1039_v54  ;;  %v555_v54 = vld [vmem:[#allocation5 + $0x1f8] sm:$0xff]  ;;  %v1057_v55 = vpack.c.bf16 %v618_v52, %v616_v50 }
 0x1f1   : > { %990 = vmatpush1.bf16.msra.mxu0 %v989_v47  ;;  %v991_v56 = vpack.c.bf16 %v555_v54, %v553_v53 }
 0x1f3   : > { %1042 = vmatpush1.bf16.msra.mxu1 %v1041_v58  ;;  %v554_v58 = vld [vmem:[#allocation5 + $0x1f0] sm:$0xff]  ;;  %992 = vmatprep.subr.bf16.mxu0 %v991_v56 }
 0x1f4   : > { %1044 = vmatprep.subr.bf16.mxu1 %v1043_v11 }
 0x1f7   : > { %1046 = vmatpush1.bf16.msra.mxu1 %v1045_v14 }
 0x1f8   : > { %1048 = vmatprep.subr.bf16.mxu1 %v1047_v24 }
 0x1fb   : > { %1050 = vmatpush1.bf16.msra.mxu1 %v1049_v27 }
 0x1fc   : > { %1052 = vmatprep.subr.bf16.mxu1 %v1051_v37 }
 0x1ff   : > { %1054 = vmatpush1.bf16.msra.mxu1 %v1053_v40 }
 0x200   : > { %1056 = vmatprep.subr.bf16.mxu1 %v1055_v51 }
 0x203   : > { %1058 = vmatpush1.bf16.msra.mxu1 %v1057_v55 }
 0x299   : > { %v432_v59 = vpop.f32.mrb[0].mxu1 }
 0x29a   : > { %v437_v60 = vrot.slane %v432_v59, 1  ;;  %v927_v61 = vpop.f32.mrb[1].mxu1 }
 0x29c   : > { %v439_v62 = vadd.f32 %v437_v60, %v432_v59  ;;  %v993_v59 = vpack.c.bf16 %v554_v58, %v552_v57 }
 0x29e   : > { %v901_v63 = vmul.f32 -1.442695, %v439_v62  ;;  %994 = vmatpush1.bf16.msra.mxu0 %v993_v59 }
 0x2a0   : > { %1125 = vpow2.f32 %v901_v63 }
 0x2aa   : > { %v1126_v3 = vpop.eup %1125 }
 0x2ab   : > { %v443_v7 = vadd.f32 1.0, %v1126_v3 }
 0x2ad   : > { %1127 = vrcp.f32 %v443_v7 }
 0x2b7   : > { %v1128_v46 = vpop.eup %1127 }
 0x2b8   : > { %v449_v16 = vrot.slane %v1128_v46, %v1491_v36 }
 0x2ba   : > { %455 = vbcast.lane.b32.xlu1 %v449_v16, 264  ;;  %451 = vbcast.lane.b32.xlu0 %v449_v16, 256 }
 0x32c   : > { %v456_v60 = vpop.permute.xlu1 %455  ;;  %v452_v61 = vpop.permute.xlu0 %451 }
 0x32d   : > { %v459_v62 = vmul.f32 %v456_v60, %v1465_v2  ;;  %v1496_v63 = vmul.f32 %v456_v60, %v1471_v5  ;;  %v457_v3 = vmul.f32 %v452_v61, %v1461_v0  ;;  %v458_v4 = vmul.f32 %v452_v61, %v1463_v1 }
 0x32f   : > { %v461_v6 = vadd.f32 %v459_v62, %v457_v3  ;;  %v468_v7 = vadd.f32 %v1496_v63, %v458_v4  ;;  %v478_v8 = vmax.f32 %v457_v3, %v459_v62  ;;  %v485_v9 = vmax.f32 %v458_v4, %v1496_v63 }
 0x331   : > { %v462_v10 = vrot.slane %v461_v6, 4  ;;  %v469_v11 = vrot.slane %v468_v7, 4  ;;  %v479_v12 = vrot.slane %v478_v8, 4  ;;  %v486_v13 = vrot.slane %v485_v9, 4 }
 0x333   : > { %v463_v14 = vadd.f32 %v462_v10, %v461_v6  ;;  %v470_v15 = vadd.f32 %v469_v11, %v468_v7  ;;  %v480_v2 = vmax.f32 %v478_v8, %v479_v12  ;;  %v487_v17 = vmax.f32 %v485_v9, %v486_v13 }
 0x335   : > { %v464_v5 = vrot.slane %v463_v14, 2  ;;  %v481_v18 = vrot.slane %v480_v2, 2  ;;  %v488_v19 = vrot.slane %v487_v17, 2  ;;  %v471_v0 = vrot.slane %v470_v15, 2 }
 0x337   : > { %v465_v20 = vadd.f32 %v464_v5, %v463_v14  ;;  %v482_v1 = vmax.f32 %v480_v2, %v481_v18  ;;  %v489_v21 = vmax.f32 %v487_v17, %v488_v19  ;;  %v472_v22 = vadd.f32 %v471_v0, %v470_v15 }
 0x339   : > { %v490_v23 = vrot.slane %v489_v21, 1  ;;  %v483_v24 = vrot.slane %v482_v1, 1  ;;  %v473_v25 = vrot.slane %v472_v22, 1  ;;  %v466_v26 = vrot.slane %v465_v20, 1 }
 0x33b   : > { %v491_v27 = vmax.f32 %v489_v21, %v490_v23  ;;  %v484_v28 = vmax.f32 %v482_v1, %v483_v24  ;;  %v474_v29 = vadd.f32 %v473_v25, %v472_v22  ;;  %v467_v30 = vadd.f32 %v466_v26, %v465_v20 }
 0x33d   : > { %755 = vmatprep.mubr.f32.mxu1 %v491_v27  ;;  %v477_v31 = vmul.f32 0.0625, %v474_v29  ;;  %v476_v32 = vmul.f32 0.0625, %v467_v30 }
 0x33e   : > { %756 = vmatmul.mubr.f32.vlgmr.msra.gmra.mrb[2].mxu1 %v484_v28 }
 0x33f   : > { %684 = vmatprep.mubr.f32.mxu0 %v477_v31 }
 0x340   : > { %685 = vmatmul.mubr.f32.vlgmr.msra.gmra.mrb[2].mxu0 %v476_v32 }
 0x411   : > { %v757_v33 = vpop.f32.mrb[2].mxu1 }
 0x412   : > { %v759_v34 = vpop.f32.mrb[3].mxu1 }
 0x413   : > { %v686_v35 = vpop.f32.mrb[2].mxu0 }
 0x414   : > { %v758_v37 = vadd.f32 %v757_v33, %v686_v35  ;;  %v688_v38 = vpop.f32.mrb[3].mxu0 }
 0x415   : > { %v760_v39 = vadd.f32 %v759_v34, %v688_v38 }
 0x416   : > { %v902_v40 = vmul.f32 -1.442695, %v758_v37 }
 0x417   : > { %v903_v41 = vmul.f32 -1.442695, %v760_v39 }
 0x418   : > { %1129 = vpow2.f32 %v902_v40 }
 0x419   : > { %1131 = vpow2.f32 %v903_v41 }
 0x422   : > { %v1130_v42 = vpop.eup %1129 }
 0x423   : > { %v1132_v43 = vpop.eup %1131  ;;  %v768_v44 = vadd.f32 1.0, %v1130_v42 }
 0x424   : > { %v769_v45 = vadd.f32 1.0, %v1132_v43 }
 0x425   : > { %1133 = vrcp.f32 %v768_v44 }
 0x426   : > { %1135 = vrcp.f32 %v769_v45 }
 0x42f   : > { %v1134_v46 = vpop.eup %1133 }
 0x430   : > { %v1136_v47 = vpop.eup %1135  ;;  %v777_v48 = vrot.slane %v1134_v46, %v1491_v36 }
 0x431   : > { %v781_v49 = vrot.slane %v1136_v47, %v1491_v36 }
 0x432   : > { %v782_v50 = vmul.f32 %v777_v48, %v457_v3  ;;  %v784_v16 = vmul.f32 %v777_v48, %v459_v62 }
 0x433   : > { %v783_v51 = vmul.f32 %v781_v49, %v458_v4  ;;  %v785_v52 = vmul.f32 %v781_v49, %v1496_v63 }
 0x434   : > { %786 = vst [vmem:[%s230_s6] sm:$0xff] %v782_v50  ;;  %788 = vst [vmem:[%s230_s6 + $0x10] sm:$0xff] %v784_v16 }
 0x435   : > { %787 = vst [vmem:[%s230_s6 + $0x8] sm:$0xff] %v783_v51  ;;  %789 = vst [vmem:[%s230_s6 + $0x18] sm:$0xff] %v785_v52 }
 0x436   : > { %1208 = shalt.err (!%p1205_p7)
}
 0x437   : > { %s1209_s21 = scalar_lea.hbm %s1510_s25, 512  ;;  %s1213_s13 = scalar_lea.hbm %s1561_s4, 1024 }
 0x438   : > { %p1210_p9 = scmp.ne.s32.totalorder %s1510_s25, %s1209_s21  ;;  %p1214_p5 = scmp.lt.u32.totalorder %s1510_s25, %s1561_s4 }
 0x439   : > { %p1215_p11 = scmp.lt.u32.totalorder %s1213_s13, %s1209_s21  ;;  %p1217_p4 = scmp.lt.u32.totalorder %s1209_s21, %s1510_s25 }
 0x43a   : > { %p1211_p1 = pnand %p1210_p9, %p1396_p12 }
 0x43b   : > { %p1216_p2 = por %p1215_p11, %p1214_p5 }
 0x43c   : > { %p1212_p0 = pneg %p1211_p1 }
 0x43d   : > { %p1218_p6 = por %p1217_p4, %p1216_p2 }
 0x43f   : > { %p1219_p8 = pnand %p1218_p6, %p1212_p0 }
 0x441   : > { %1222 = shalt.err (!%p1219_p8)
}
 0x442   : > { %s1275_s10 = smov 256   ;;  %s1276_s6 = smov 16  }
 0x443   : > { %1067 = dma.vmem_to_hbm [thread:$0]  (%p1396_p12), %s1512_s7, 512, %s1510_s25, %s791_s19, %s1275_s10, %s1275_s10, %s1276_s6  }
 0x444 PF: > { %s819_s26 = sand.u32 1, %s1253_s15   ;;  %p1576_p10 = scmp.ne.s32.totalorder %s1566_s22, 0 }
 0x445   : > { %p1577_p13 = scmp.ge.s32.totalorder %s1265_s18, 2  ;;  %s820_s8 = scalar_lea.sflag [#allocation4], %s819_s26 }
 0x447   : > { %p1078_p3 = pnand %p1577_p13, %p1576_p10 }
 0x449   : > { %1248 = dma.done.wait (!%p1078_p3), %s820_s8, 512  }
 0x44a   : > { %1250 = vsyncadd (!%p1078_p3), %s820_s8, 4294966784  ;;  %p18_p7 = scmp.ge.s32.totalorder %s1358_s27, 4   ;;  %s1578_s15 = smov %s1257_s16 }
 0x44b   : > { %s1579_s16 = smov %s1261_s17  ;;  %s1580_s17 = smov %s1392_s24 }
 0x44c   : > { %s1581_s18 = smov %s1358_s27  ;;  %20 = sbr.rel (!%p18_p7) target bundleno = 6 (0x6), region = 85 }
 0x453   :  { %825 = vsyncpa [#allocation3], 1 }
 0x454   :  { %827 = vsyncpa [#allocation3 + $0x1], 1 }
 0x455   :  { %828 = vsyncpa [#allocation6], 1 }
 0x456   :  { %829 = vsyncpa [#allocation4], 1 }
 0x457   :  { %831 = vsyncpa [#allocation4 + $0x1], 1 }

</bundles_post_ra>
